<compile_context>
chip_gen: v7x
topology: tpu7x:2x2x1
jax: 0.10.0
libtpu: 0.0.40
codegen_flags: <defaults>
</compile_context>

<pallas_src>
import functools

import jax
import jax.numpy as jnp
from jax.experimental import pallas as pl
from jax.experimental.pallas import tpu as pltpu

_SUB = 8      # sublane granularity (f32)
_LANE = 128   # lane granularity


def _round_up(x, m):
    return ((x + m - 1) // m) * m


def _geodesic_loss_kernel(c1, c2, b_true, tiles_per_core,
                          logits_ref, tgt_ref, ypred1_ref, ytrue1_ref,
                          centers_ref, out_ref):
    core = pl.program_id(0)
    i = pl.program_id(1)
    # Unclamped global batch-tile index (the index_map clamps the DMA; rows of
    # a duplicated / overhanging tile are masked out below).
    t = core * tiles_per_core + i

    logits = logits_ref[...].astype(jnp.float32)    # (TB, K)
    tgt = tgt_ref[...].astype(jnp.int32)            # (TB, 1)
    yp1 = ypred1_ref[...].astype(jnp.float32)       # (TB, D)
    yt1 = ytrue1_ref[...].astype(jnp.float32)       # (TB, D)

    tb, k = logits.shape

    col = jax.lax.broadcasted_iota(jnp.int32, (tb, k), 1)             # (TB, K)

    # ---- l1: CrossEntropyLoss(logits, targets), reduction='mean' ----
    m = jnp.max(logits, axis=1, keepdims=True)                        # (TB, 1)
    lse = jnp.log(jnp.sum(jnp.exp(logits - m), axis=1, keepdims=True)) + m
    tgt_onehot = (col == tgt).astype(jnp.float32)                     # (TB, K)
    picked = jnp.sum(logits * tgt_onehot, axis=1, keepdims=True)      # (TB, 1)
    ce_row = lse - picked                                             # (TB, 1)

    # ---- argmax(logits, dim=1) as a one-hot (first index on ties) ----
    is_max = logits == m
    first_idx = jnp.min(jnp.where(is_max, col, k), axis=1, keepdims=True)
    # One-hot in the centers' native dtype: selecting a single row is bit-exact
    # in any dtype and keeps the MXU on its bf16-native path for bf16 centers.
    amax_onehot = (col == first_idx).astype(centers_ref.dtype)        # (TB, K)

    # ---- y = cluster_centers[argmax]; per-row squared error (one temp) ----
    y = jnp.dot(amax_onehot, centers_ref[...],
                preferred_element_type=jnp.float32)                   # (TB, D)
    diff = y + yp1 - yt1                                              # (TB, D)
    sq_row = jnp.sum(diff * diff, axis=1, keepdims=True)              # (TB, 1)

    # ---- mask rows past the true batch (partial / duplicated tiles) ----
    # jnp.where-select so NaN/Inf garbage in out-of-bounds rows cannot leak.
    row = t * tb + jax.lax.broadcasted_iota(jnp.int32, (tb, 1), 0)
    valid = row < b_true

    # Normalization constants (1/B and alpha/(B*D)) are baked in: no divides.
    part = (jnp.sum(jnp.where(valid, ce_row, 0.0)) * c1
            + jnp.sum(jnp.where(valid, sq_row, 0.0)) * c2)

    @pl.when(i == 0)
    def _():
        out_ref[...] = jnp.zeros_like(out_ref)

    # Broadcast-accumulate into this core's lane-dense (8, 128) block; every
    # element of the block holds the core's running partial sum.
    out_ref[...] += part


def geodesic_loss_q(logits, targets, ypred1, ytrue1, cluster_centers, alpha,
                    *, batch_tile=None, core_splits=2):
    """loss = CE(logits, targets) + alpha * MSE(centers[argmax(logits)] + ypred1, ytrue1).

    ypred1 / ytrue1 / cluster_centers may (and should, for large B*D) be
    bfloat16: the kernel is HBM-bandwidth bound on the (B, D) streams and
    upcasts each tile to f32 internally.  Result is float32.
    """
    B, K = logits.shape
    D = cluster_centers.shape[1]

    k_pad = _round_up(K, _LANE)
    d_pad = _round_up(D, _LANE)
    lg_item = jnp.dtype(logits.dtype).itemsize
    yp_item = jnp.dtype(ypred1.dtype).itemsize
    yt_item = jnp.dtype(ytrue1.dtype).itemsize
    c_item = jnp.dtype(cluster_centers.dtype).itemsize

    # VMEM accounting: lane-padded, double-buffered streamed inputs plus the
    # resident (double-buffered) centers tile.  The ~28 MiB tile budget fits
    # every generation once vmem_limit_bytes is raised below (v5e/v6e: 128 MiB
    # physical, v7x: 64 MiB physical per TensorCore).
    centers_vmem = 2 * _round_up(K, _SUB) * d_pad * c_item
    per_row = 2 * (k_pad * lg_item + _LANE * 4
                   + d_pad * yp_item + d_pad * yt_item)
    tile_budget = 28 << 20

    if batch_tile is None:
        avail = max(tile_budget - centers_vmem, per_row * _SUB)
        tb = min(avail // per_row, 4096)
    else:
        tb = int(batch_tile)
    tb = max(_SUB, (tb // _SUB) * _SUB)          # multiple of 8 sublanes
    tb = min(tb, _round_up(B, _SUB))             # no pad: mask handles the tail

    num_tiles = -(-B // tb)
    nc = max(1, min(int(core_splits), num_tiles))    # feeds both v7x TCs
    tiles_per_core = -(-num_tiles // nc)

    vmem_limit = int(min(max(per_row * tb + centers_vmem + (1 << 20), 32 << 20),
                         56 << 20))

    def row_map(c, i):
        # Clamp so the DMA of an overhanging tile (odd tile count split across
        # cores) stays in bounds; its rows are masked inside the kernel.
        return (jnp.minimum(c * tiles_per_core + i, num_tiles - 1), 0)

    tgt2 = targets.reshape(B, 1).astype(jnp.int32)

    kernel = functools.partial(
        _geodesic_loss_kernel,
        1.0 / float(B),                      # CE mean factor
        float(alpha) / float(B * D),         # alpha * MSE mean factor
        int(B), int(tiles_per_core))

    in_bytes = (logits.size * lg_item + tgt2.size * 4
                + ypred1.size * yp_item + ytrue1.size * yt_item
                + cluster_centers.size * c_item)
    cost = pl.CostEstimate(
        flops=2 * B * K * D + 8 * B * D + 10 * B * K,
        transcendentals=B * K + B,
        bytes_accessed=in_bytes + nc * _SUB * _LANE * 4)

    out = pl.pallas_call(
        kernel,
        out_shape=jax.ShapeDtypeStruct((nc * _SUB, _LANE), jnp.float32),
        grid=(nc, tiles_per_core),
        in_specs=[
            pl.BlockSpec((tb, K), row_map),
            pl.BlockSpec((tb, 1), row_map),
            pl.BlockSpec((tb, D), row_map),
            pl.BlockSpec((tb, D), row_map),
            pl.BlockSpec((K, D), lambda c, i: (0, 0)),
        ],
        out_specs=pl.BlockSpec((_SUB, _LANE), lambda c, i: (c, 0)),
        compiler_params=pltpu.CompilerParams(
            dimension_semantics=("parallel", "arbitrary"),
            vmem_limit_bytes=vmem_limit),
        cost_estimate=cost,
    )(logits, tgt2, ypred1, ytrue1, cluster_centers)

    # Each core's partial is replicated across its (8, 128) block; sum partials.
    return jnp.sum(out.reshape(nc, _SUB, _LANE)[:, 0, 0])


def _reference(logits, targets, ypred1, ytrue1, centers, alpha):
    log_sm = jax.nn.log_softmax(logits, axis=1)
    nll = -jnp.take_along_axis(log_sm, targets[:, None].astype(jnp.int32),
                               axis=1)[:, 0]
    l1 = jnp.mean(nll)
    ind = jnp.argmax(logits, axis=1)
    y = centers[ind]
    l2 = jnp.mean((y + ypred1 - ytrue1) ** 2)
    return l1 + alpha * l2


if __name__ == "__main__":
    B, K, D = 12, 8, 128      # batch, n_clusters, feature dim
    alpha = 0.5

    key = jax.random.PRNGKey(0)
    k1, k2, k3, k4, k5 = jax.random.split(key, 5)

    # Deterministic synthetic "kmeans" cluster centers (no checkpoint load).
    cluster_centers = jax.random.normal(k1, (K, D), dtype=jnp.float32)

    logits = jax.random.normal(k2, (B, K), dtype=jnp.float32)          # ypred[0]
    targets = jax.random.randint(k3, (B,), 0, K, dtype=jnp.int32)      # ytrue[0]
    ypred1 = 0.1 * jax.random.normal(k4, (B, D), dtype=jnp.float32)    # ypred[1]
    ytrue1 = jax.random.normal(k5, (B, D), dtype=jnp.float32)          # ytrue[1]

    ref = _reference(logits, targets, ypred1, ytrue1, cluster_centers, alpha)

    # (1) batch_tile=8 exercises the two-core partial-sum path and the unpadded
    #     partial last block (rows 12..15 are masked, unspecified data).
    out_a = geodesic_loss_q(logits, targets, ypred1, ytrue1, cluster_centers,
                            alpha, batch_tile=8)
    out_a = jax.block_until_ready(out_a)
    assert jnp.allclose(out_a, ref, rtol=1e-5, atol=1e-5), (out_a, ref)

    # (2) Default VMEM-budget-derived tile (single partial tile, one core).
    out_b = geodesic_loss_q(logits, targets, ypred1, ytrue1, cluster_centers,
                            alpha)
    out_b = jax.block_until_ready(out_b)
    assert jnp.allclose(out_b, ref, rtol=1e-5, atol=1e-5), (out_b, ref)

    # (3) Recommended bf16 fast path for the HBM-bound (B, D) streams + centers.
    out_c = geodesic_loss_q(logits, targets,
                            ypred1.astype(jnp.bfloat16),
                            ytrue1.astype(jnp.bfloat16),
                            cluster_centers.astype(jnp.bfloat16),
                            alpha, batch_tile=8)
    out_c = jax.block_until_ready(out_c)
    assert jnp.allclose(out_c, ref, rtol=5e-2, atol=5e-2), (out_c, ref)

    print("KERNEL_OK")
</pallas_src>

<mosaic_0001>
module attributes {stable_mosaic.version = 11 : i64} {
  func.func @_geodesic_loss_kernel(%arg0: i32, %arg1: i32, %arg2: memref<8x8xf32, #tpu.memory_space<vmem>>, %arg3: memref<8x1xi32, #tpu.memory_space<vmem>>, %arg4: memref<8x128xf32, #tpu.memory_space<vmem>>, %arg5: memref<8x128xf32, #tpu.memory_space<vmem>>, %arg6: memref<8x128xf32, #tpu.memory_space<vmem>>, %arg7: memref<8x128xf32, #tpu.memory_space<vmem>>) attributes {dimension_semantics = [#tpu.dimension_semantics<parallel>, #tpu.dimension_semantics<arbitrary>], iteration_bounds = array<i64: 2, 1>, scalar_prefetch = 0 : i64, scratch_operands = 0 : i64, tpu.core_type = #tpu.core_type<tc>, window_params = [{transform_indices = @transform_0, window_bounds = array<i64: 8, 8>}, {transform_indices = @transform_1, window_bounds = array<i64: 8, 1>}, {transform_indices = @transform_2, window_bounds = array<i64: 8, 128>}, {transform_indices = @transform_3, window_bounds = array<i64: 8, 128>}, {pipeline_mode = #tpu.pipeline_mode<synchronous>, transform_indices = @transform_4, window_bounds = array<i64: 8, 128>}, {transform_indices = @transform_5, window_bounds = array<i64: 8, 128>}]} {
    %c1_i32 = arith.constant 1 : i32
    %0 = arith.muli %arg0, %c1_i32 : i32
    %1 = arith.addi %0, %arg1 : i32
    %c0 = arith.constant 0 : index
    %c0_0 = arith.constant 0 : index
    %2 = vector.load %arg2[%c0, %c0_0] : memref<8x8xf32, #tpu.memory_space<vmem>>, vector<8x8xf32>
    %c0_1 = arith.constant 0 : index
    %c0_2 = arith.constant 0 : index
    %3 = vector.load %arg3[%c0_1, %c0_2] : memref<8x1xi32, #tpu.memory_space<vmem>>, vector<8x1xi32>
    %c0_3 = arith.constant 0 : index
    %c0_4 = arith.constant 0 : index
    %4 = vector.load %arg4[%c0_3, %c0_4] : memref<8x128xf32, #tpu.memory_space<vmem>>, vector<8x128xf32>
    %c0_5 = arith.constant 0 : index
    %c0_6 = arith.constant 0 : index
    %5 = vector.load %arg5[%c0_5, %c0_6] : memref<8x128xf32, #tpu.memory_space<vmem>>, vector<8x128xf32>
    %6 = tpu.iota {dimensions = array<i32: 1>} : vector<8x8xi32>
    %cst = arith.constant dense<0xFF800000> : vector<8xf32>
    %7 = vector.multi_reduction <maximumf>, %2, %cst [1] : vector<8x8xf32> to vector<8xf32>
    %8 = vector.shape_cast %7 : vector<8xf32> to vector<8x1xf32>
    %9 = vector.broadcast %8 : vector<8x1xf32> to vector<8x8xf32>
    %10 = arith.subf %2, %9 : vector<8x8xf32>
    %11 = math.exp %10 : vector<8x8xf32>
    %cst_7 = arith.constant dense<0.000000e+00> : vector<8xf32>
    %12 = vector.multi_reduction <add>, %11, %cst_7 [1] : vector<8x8xf32> to vector<8xf32>
    %13 = vector.shape_cast %12 : vector<8xf32> to vector<8x1xf32>
    %14 = math.log %13 : vector<8x1xf32>
    %15 = arith.addf %14, %8 : vector<8x1xf32>
    %16 = vector.broadcast %3 : vector<8x1xi32> to vector<8x8xi32>
    %17 = arith.cmpi eq, %6, %16 : vector<8x8xi32>
    %18 = arith.extui %17 : vector<8x8xi1> to vector<8x8xi32>
    %19 = arith.sitofp %18 : vector<8x8xi32> to vector<8x8xf32>
    %20 = arith.mulf %2, %19 : vector<8x8xf32>
    %cst_8 = arith.constant dense<0.000000e+00> : vector<8xf32>
    %21 = vector.multi_reduction <add>, %20, %cst_8 [1] : vector<8x8xf32> to vector<8xf32>
    %22 = vector.shape_cast %21 : vector<8xf32> to vector<8x1xf32>
    %23 = arith.subf %15, %22 : vector<8x1xf32>
    %24 = vector.broadcast %8 : vector<8x1xf32> to vector<8x8xf32>
    %25 = arith.cmpf oeq, %2, %24 : vector<8x8xf32>
    %c8_i32 = arith.constant 8 : i32
    %26 = vector.broadcast %c8_i32 : i32 to vector<8x8xi32>
    %27 = arith.select %25, %6, %26 : vector<8x8xi1>, vector<8x8xi32>
    %cst_9 = arith.constant dense<2147483647> : vector<8xi32>
    %28 = vector.multi_reduction <minsi>, %27, %cst_9 [1] : vector<8x8xi32> to vector<8xi32>
    %29 = vector.shape_cast %28 : vector<8xi32> to vector<8x1xi32>
    %30 = vector.broadcast %29 : vector<8x1xi32> to vector<8x8xi32>
    %31 = arith.cmpi eq, %6, %30 : vector<8x8xi32>
    %32 = arith.extui %31 : vector<8x8xi1> to vector<8x8xi32>
    %33 = arith.sitofp %32 : vector<8x8xi32> to vector<8x8xf32>
    %c0_10 = arith.constant 0 : index
    %c0_11 = arith.constant 0 : index
    %34 = vector.load %arg6[%c0_10, %c0_11] : memref<8x128xf32, #tpu.memory_space<vmem>>, vector<8x128xf32>
    %cst_12 = arith.constant dense<0.000000e+00> : vector<8x128xf32>
    %35 = tpu.matmul %33, %34, %cst_12 {dimension_numbers = #tpu.dot_dimension_numbers<[1], [0], [0], [1], [0, 0, 1, 1], [], []>} : vector<8x8xf32>, vector<8x128xf32>, vector<8x128xf32> -> vector<8x128xf32>
    %36 = arith.addf %35, %4 : vector<8x128xf32>
    %37 = arith.subf %36, %5 : vector<8x128xf32>
    %38 = arith.mulf %37, %37 : vector<8x128xf32>
    %cst_13 = arith.constant dense<0.000000e+00> : vector<8xf32>
    %39 = vector.multi_reduction <add>, %38, %cst_13 [1] : vector<8x128xf32> to vector<8xf32>
    %40 = vector.shape_cast %39 : vector<8xf32> to vector<8x1xf32>
    %c8_i32_14 = arith.constant 8 : i32
    %41 = arith.muli %1, %c8_i32_14 : i32
    %42 = tpu.iota {dimensions = array<i32: 0>} : vector<8x1xi32>
    %43 = vector.broadcast %41 : i32 to vector<8x1xi32>
    %44 = arith.addi %43, %42 : vector<8x1xi32>
    %c12_i32 = arith.constant 12 : i32
    %45 = vector.broadcast %c12_i32 : i32 to vector<8x1xi32>
    %46 = arith.cmpi slt, %44, %45 : vector<8x1xi32>
    %cst_15 = arith.constant 0.000000e+00 : f32
    %47 = vector.broadcast %cst_15 : f32 to vector<8x1xf32>
    %48 = arith.select %46, %23, %47 : vector<8x1xi1>, vector<8x1xf32>
    %49 = vector.shape_cast %48 : vector<8x1xf32> to vector<1x8x1xf32>
    %cst_16 = arith.constant dense<0.000000e+00> : vector<1xf32>
    %50 = vector.multi_reduction <add>, %49, %cst_16 [1, 2] : vector<1x8x1xf32> to vector<1xf32>
    %51 = vector.shape_cast %50 : vector<1xf32> to vector<1x1x1xf32>
    %52 = vector.extract %51[0, 0, 0] : f32 from vector<1x1x1xf32>
    %cst_17 = arith.constant 0.0833333358 : f32
    %53 = arith.mulf %52, %cst_17 : f32
    %cst_18 = arith.constant 0.000000e+00 : f32
    %54 = vector.broadcast %cst_18 : f32 to vector<8x1xf32>
    %55 = arith.select %46, %40, %54 : vector<8x1xi1>, vector<8x1xf32>
    %56 = vector.shape_cast %55 : vector<8x1xf32> to vector<1x8x1xf32>
    %cst_19 = arith.constant dense<0.000000e+00> : vector<1xf32>
    %57 = vector.multi_reduction <add>, %56, %cst_19 [1, 2] : vector<1x8x1xf32> to vector<1xf32>
    %58 = vector.shape_cast %57 : vector<1xf32> to vector<1x1x1xf32>
    %59 = vector.extract %58[0, 0, 0] : f32 from vector<1x1x1xf32>
    %cst_20 = arith.constant 3.25520843E-4 : f32
    %60 = arith.mulf %59, %cst_20 : f32
    %61 = arith.addf %53, %60 : f32
    %c0_i32 = arith.constant 0 : i32
    %62 = arith.cmpi eq, %arg1, %c0_i32 : i32
    %63 = arith.extui %62 : i1 to i32
    %c0_i32_21 = arith.constant 0 : i32
    %64 = arith.cmpi ne, %63, %c0_i32_21 : i32
    scf.if %64 {
      %cst_26 = arith.constant 0.000000e+00 : f32
      %69 = vector.broadcast %cst_26 : f32 to vector<8x128xf32>
      %c0_27 = arith.constant 0 : index
      %c0_28 = arith.constant 0 : index
      %70 = vector.load %arg7[%c0_27, %c0_28] : memref<8x128xf32, #tpu.memory_space<vmem>>, vector<8x128xf32>
      tpu.vector_store %arg7[%c0_27, %c0_28], %69 {strides = array<i32>} : memref<8x128xf32, #tpu.memory_space<vmem>>, vector<8x128xf32>,
    } else {
    }
    %c0_22 = arith.constant 0 : index
    %c0_23 = arith.constant 0 : index
    %65 = vector.load %arg7[%c0_22, %c0_23] : memref<8x128xf32, #tpu.memory_space<vmem>>, vector<8x128xf32>
    %66 = vector.broadcast %61 : f32 to vector<8x128xf32>
    %67 = arith.addf %65, %66 : vector<8x128xf32>
    %c0_24 = arith.constant 0 : index
    %c0_25 = arith.constant 0 : index
    %68 = vector.load %arg7[%c0_24, %c0_25] : memref<8x128xf32, #tpu.memory_space<vmem>>, vector<8x128xf32>
    tpu.vector_store %arg7[%c0_24, %c0_25], %67 {strides = array<i32>} : memref<8x128xf32, #tpu.memory_space<vmem>>, vector<8x128xf32>,
    return
  }
  func.func @transform_0(%arg0: i32, %arg1: i32) -> (i32, i32) {
    %c1_i32 = arith.constant 1 : i32
    %0 = arith.muli %arg0, %c1_i32 : i32
    %1 = arith.addi %0, %arg1 : i32
    %c1_i32_0 = arith.constant 1 : i32
    %2 = arith.minsi %1, %c1_i32_0 : i32
    %c0_i32 = arith.constant 0 : i32
    %c0_i32_1 = arith.constant 0 : i32
    return %2, %c0_i32 : i32, i32
  }
  func.func @transform_1(%arg0: i32, %arg1: i32) -> (i32, i32) {
    %c1_i32 = arith.constant 1 : i32
    %0 = arith.muli %arg0, %c1_i32 : i32
    %1 = arith.addi %0, %arg1 : i32
    %c1_i32_0 = arith.constant 1 : i32
    %2 = arith.minsi %1, %c1_i32_0 : i32
    %c0_i32 = arith.constant 0 : i32
    %c0_i32_1 = arith.constant 0 : i32
    return %2, %c0_i32 : i32, i32
  }
  func.func @transform_2(%arg0: i32, %arg1: i32) -> (i32, i32) {
    %c1_i32 = arith.constant 1 : i32
    %0 = arith.muli %arg0, %c1_i32 : i32
    %1 = arith.addi %0, %arg1 : i32
    %c1_i32_0 = arith.constant 1 : i32
    %2 = arith.minsi %1, %c1_i32_0 : i32
    %c0_i32 = arith.constant 0 : i32
    %c0_i32_1 = arith.constant 0 : i32
    return %2, %c0_i32 : i32, i32
  }
  func.func @transform_3(%arg0: i32, %arg1: i32) -> (i32, i32) {
    %c1_i32 = arith.constant 1 : i32
    %0 = arith.muli %arg0, %c1_i32 : i32
    %1 = arith.addi %0, %arg1 : i32
    %c1_i32_0 = arith.constant 1 : i32
    %2 = arith.minsi %1, %c1_i32_0 : i32
    %c0_i32 = arith.constant 0 : i32
    %c0_i32_1 = arith.constant 0 : i32
    return %2, %c0_i32 : i32, i32
  }
  func.func @transform_4(%arg0: i32, %arg1: i32) -> (i32, i32) {
    %c0_i32 = arith.constant 0 : i32
    %c0_i32_0 = arith.constant 0 : i32
    %c0_i32_1 = arith.constant 0 : i32
    return %c0_i32, %c0_i32_0 : i32, i32
  }
  func.func @transform_5(%arg0: i32, %arg1: i32) -> (i32, i32) {
    %c0_i32 = arith.constant 0 : i32
    %c0_i32_0 = arith.constant 0 : i32
    return %arg0, %c0_i32 : i32, i32
  }
}

</mosaic_0001>

<bundles_post_ra>
// kernel: tpu_custom_call.1
= control target key start
LH: loop header
LB: loop body
LE: loop exit
PB: predicated region body
PF: predicated region fallthrough
CT: control target
= control target key end

     0   :  { %10 = vsyncpa [#allocation3], 0  ;;  %s1009_s0 = inlined_call_operand.vmem [shape: f32[12,8], index: 0, kind: input, shape index: {}]   ;;  %s1010_s1 = inlined_call_operand.vmem [shape: s32[12,1], index: 1, kind: input, shape index: {}]   ;;  %s1011_s2 = inlined_call_operand.vmem [shape: f32[12,128], index: 2, kind: input, shape index: {}]   ;;  %s1012_s3 = inlined_call_operand.vmem [shape: f32[12,128], index: 3, kind: input, shape index: {}]   ;;  %s1013_s4 = inlined_call_operand.vmem [shape: f32[8,128], index: 4, kind: input, shape index: {}]   ;;  %s1014_s5 = inlined_call_operand.hbm [shape: f32[16,128], index: 5, kind: output, shape index: {}]  }
   0x1   :  { %12 = vsyncpa [#allocation3 + $0x1], 0  ;;  %s873_s18 = smov 0   ;;  %s875_s19 = smov 0  }
   0x2   :  { %s877_s20 = smov 0   ;;  %s879_s21 = smov 0  }
   0x3   :  { %s881_s22 = smov 0   ;;  %s883_s23 = smov 0  }
   0x4 LB: > { %s654_s24 = sadd.s32 4294967295, %s837_s23   ;;  %s655_s25 = sadd.s32 4294967294, %s837_s23   ;;  %s837_s23 = sphi %s883_s23, %s18_s23   ;;  %s833_s22 = sphi %s881_s22, %s1021_s22   ;;  %s829_s21 = sphi %s879_s21, %s1020_s21   ;;  %s825_s20 = sphi %s877_s20, %s1019_s20   ;;  %s821_s19 = sphi %s875_s19, %s1018_s19   ;;  %s817_s18 = sphi %s873_s18, %s1017_s18  }
   0x5   : > { %s30_s26 = sadd.s32 1, %s833_s22  ;;  %s186_s27 = sadd.s32 1, %s825_s20 }
   0x6   : > { %p32_p0 = scmp.ge.s32.totalorder %s30_s26, 2  ;;  %p196_p1 = scmp.ne.s32.totalorder %s825_s20, %s821_s19 }
   0x7   : > { %p197_p2 = scmp.eq.s32.totalorder %s654_s24, 1  ;;  %p202_p3 = scmp.ne.s32.totalorder %s821_s19, %s817_s18 }
   0x8   : > { %s1023_s26 = smov (%p32_p0, %s30_s26), 0  ;;  %p203_p5 = scmp.eq.s32.totalorder %s655_s25, 1 }
   0x9   : > { %p913_p4 = por %p197_p2, %p196_p1  ;;  %s183_s29 = ssub.s32 %s833_s22, %s1023_s26 }
   0xa   : > { %p658_p6 = scmp.ge.s32.totalorder %s837_s23, 1  ;;  %p184_p7 = scmp.eq.s32.totalorder %s183_s29, 0 }
   0xb   : > { %p920_p8 = por %p203_p5, %p202_p3  ;;  %p276_p9 = scmp.lt.s32.totalorder %s837_s23, 3 }
   0xc   : > { %s926_s6 = scalar_select %p184_p7, %s825_s20, %s186_s27  }
   0xd   : > { %p277_p10 = pnand %p658_p6, %p276_p9 }
   0xe   : > { %p328_p11 = scmp.lt.s32.totalorder (!%p277_p10), %s829_s21, 1  ;;  %vm374_vm0 = vcmask (!%p277_p10), 64512   ;;  %v372_v2 = vlaneseq (!%p277_p10)  ;;  %v839_v13 = vmov (!%p277_p10), 0   ;;  %v840_v19 = vmov (!%p277_p10), 0.0   ;;  %v418_v20 = vld [vmem:[%s1013_s4] sm:$0xff] (!%p277_p10)  ;;  %s679_s17 = sshll.u32 (!%p277_p10), %s829_s21, 3 }
   0xf   : > { %280 = sbr.rel (%p277_p10) target bundleno = 1055 (0x41f), region = 40  ;;  %753 = vset.pattern.permute.xlu1 (!%p277_p10), %v839_v13  ;;  %754 = vset.pattern.permute.xlu0 (!%p277_p10), %v839_v13  ;;  %vm841_vm3 = vmmov (!%p277_p10), 0   ;;  %v499_v35 = vstv (!%p277_p10), %s679_s17  ;;  %vm503_vm7 = vcmask (!%p277_p10), 7168   ;;  %s681_s15 = sshll.u32 (!%p277_p10), %s829_s21, 7 }
  0x10   : > { %v373_v3 = vand.u32 (!%p277_p10), 127, %v372_v2  ;;  %686 = vmatprep.subr.mxu0 (!%p277_p10), %v840_v19  ;;  %688 = vmatprep.mubr.msk.f32.mxu0 (!%p277_p10), %vm841_vm3, %v840_v19  ;;  %v498_v33 = vshrl.u32 (!%p277_p10), %v372_v2, 7  ;;  %s962_s29 = scalar_lea.hbm (!%p277_p10), %s1014_s5, %s681_s15 }
  0x11   : > { %687 = vmatpush3.msra.mxu0 (!%p277_p10), %v418_v20 }
  0x12   : > { %v500_v40 = vadd.s32 (!%p277_p10), %v499_v35, %v498_v33 }
  0x14   : > { %vm501_vm6 = vcmp.lt.s32.totalorder (!%p277_p10), %v500_v40, 12 }
  0x16   : > { %s329_s7 = scalar_select %p328_p11, %s829_s21, 1 }
  0x17   : > { %s842_s21 = smov [#allocation2]  }
  0x18   : > { %s1025_s7 = smov (!%p328_p11, %s329_s7), 1 }
  0x19   : > { %s930_s8 = sshll.u32 %s1025_s7, 3 }
  0x1a   : > { %s333_s11 = scalar_lea.vmem %s1009_s0, %s930_s8  ;;  %s343_s14 = scalar_lea.vmem %s1010_s1, %s930_s8 }
  0x1b   : > { %v368_v0 = vld [vmem:[%s333_s11] sm:$0xff]  ;;  %s353_s27 = scalar_lea.vmem %s1011_s2, %s930_s8  ;;  %s363_s9 = scalar_lea.vmem %s1012_s3, %s930_s8 }
  0x1c   : > { %v375_v1 = vsel %vm374_vm0, %v368_v0, -inf  ;;  %v369_v18 = vld [vmem:[%s343_s14] sm:$0xff]  ;;  %s324_s8 = sand.u32 1, %s821_s19  }
  0x1d   : > { %376 = vmax.xlane.f32.xlu0 %v375_v1  ;;  %v370_v36 = vld [vmem:[%s353_s27] sm:$0xff]  ;;  %s659_s10 = sshll.u32 %s324_s8, 3  ;;  %s538_s7 = scalar_lea.sflag [#allocation3], %s324_s8 }
  0x1e   : > { %v371_v39 = vld [vmem:[%s363_s9] sm:$0xff]  ;;  %s326_s17 = scalar_lea.vmem [#allocation2], %s659_s10  ;;  %s763_s10 = sshll.u32 %s842_s21, 4  ;;  %s764_s10 = int_to_ptr.vmem [resolvable:$false] %s763_s10 }
  0x1f   : > { %s551_s24 = sshll.u32 %s326_s17, 4  ;;  %s964_s24 = int_to_ptr.vmem [resolvable:$true] %s551_s24 }
  0x20   : > { %s759_s9 = scalar_lea.vmem %s964_s24, 128  ;;  %p766_p1 = scmp.lt.s32.totalorder %s964_s24, %s764_s10 }
  0x21   : > { %p760_p12 = scmp.ne.s32.totalorder %s964_s24, %s759_s9 }
  0x23   : > { %p761_p13 = pnand %p760_p12, %p913_p4 }
  0x25   : > { %p762_p0 = pneg %p761_p13 }
  0xaa   : > { %v377_v4 = vpop.xlane.xlu0 %376 }
  0xab   : > { %v378_v5 = vsub.f32 %v368_v0, %v377_v4  ;;  %vm398_vm1 = vcmp.eq.f32.partialorder %v368_v0, %v377_v4 }
  0xac   : > { %v399_v6 = vsel %vm398_vm1, %v373_v3, 8 }
  0xad   : > { %v379_v7 = vmul.f32 1.442695, %v378_v5  ;;  %v400_v8 = vsel %vm374_vm0, %v399_v6, 2147483647 }
  0xae   : > { %v402_v9 = vshra.s32 %v400_v8, 16  ;;  %v401_v14 = vand.u32 65535, %v400_v8 }
  0xaf   : > { %755 = vpow2.f32 %v379_v7 }
  0xb0   : > { %v404_v10 = vcvt.s32.f32 %v402_v9  ;;  %v403_v16 = vcvt.s32.f32 %v401_v14 }
  0xb2   : > { %405 = vmin.xlane.f32.xlu0 %v404_v10 }
  0xb9   : > { %v756_v11 = vpop.eup %755 }
  0xba   : > { %v381_v12 = vsel %vm374_vm0, %v756_v11, 0.0 }
  0xbb   : > { %382 = vadd.xlane.f32.xlu0 %v381_v12 }
 0x13f   : > { %v406_v15 = vpop.xlane.xlu0 %405 }
 0x140   : > { %vm407_vm2 = vcmp.eq.f32.partialorder %v404_v10, %v406_v15  ;;  %v412_v21 = vcvt.f32.s32 %v406_v15 }
 0x141   : > { %v408_v17 = vsel %vm407_vm2, %v403_v16, inf }
 0x142   : > { %409 = vmin.xlane.f32.xlu1 %v408_v17  ;;  %v413_v23 = vshll.u32 %v412_v21, 16 }
 0x148   : > { %v383_v31 = vpop.xlane.xlu0 %382 }
 0x149   : > { %757 = vlog2.f32 %v383_v31 }
 0x153   : > { %388 = vperm.xlu1 %753, %v369_v18   ;;  %v758_v32 = vpop.eup %757 }
 0x154   : > { %v385_v34 = vmul.f32 0.6931472, %v758_v32 }
 0x156   : > { %v386_v41 = vadd.f32 %v385_v34, %v377_v4 }
 0x1cf   : > { %v410_v22 = vpop.xlane.xlu1 %409 }
 0x1d0   : > { %v411_v24 = vcvt.f32.s32 %v410_v22 }
 0x1d2   : > { %v414_v25 = vadd.s32 %v413_v23, %v411_v24 }
 0x1d3   : > { %v389_v26 = vpop.permute.xlu1 %388 }
 0x1d4   : > { %vm390_vm4 = vcmp.eq.s32.totalorder %v373_v3, %v389_v26  ;;  %vm415_vm5 = vcmp.eq.s32.totalorder %v373_v3, %v414_v25 }
 0x1d5   : > { %v676_v27 = vsel %vm390_vm4, 1.0, %v840_v19  ;;  %v677_v28 = vsel %vm415_vm5, 1.0, %v840_v19 }
 0x1d6   : > { %689 = vmatmul.mubr.msk.f32.vlgmr.msra.gmra.mrb[0].mxu0 %vm374_vm0, %v677_v28  ;;  %v393_v29 = vmul.f32 %v676_v27, %v368_v0 }
 0x1d8   : > { %v394_v30 = vsel %vm374_vm0, %v393_v29, 0.0 }
 0x1d9   : > { %395 = vadd.xlane.f32.xlu0 %v394_v30 }
 0x266   : > { %v396_v37 = vpop.xlane.xlu0 %395 }
 0x267   : > { %v397_v44 = vsub.f32 %v386_v41, %v396_v37 }
 0x269   : > { %v502_v47 = vsel %vm501_vm6, %v397_v44, 0.0 }
 0x26a   : > { %v504_v48 = vsel %vm503_vm7, %v502_v47, 0.0 }
 0x2a9   : > { %v488_v38 = vpop.f32.mrb[0].mxu0 }
 0x2aa   : > { %v489_v42 = vadd.f32 %v488_v38, %v370_v36  ;;  %v690_v43 = vpop.f32.mrb[1].mxu0 }
 0x2ac   : > { %v492_v45 = vsub.f32 %v489_v42, %v371_v39 }
 0x2ae   : > { %v493_v46 = vmul.f32 %v492_v45, %v492_v45 }
 0x2b0   : > { %494 = vadd.xlane.f32.xlu0 %v493_v46 }
 0x2b4   : > { %505 = vadd.xlane.f32.xlu0 %v504_v48 }
 0x33d   : > { %v495_v49 = vpop.xlane.xlu0 %494 }
 0x33e   : > { %v515_v50 = vsel %vm501_vm6, %v495_v49, 0.0 }
 0x33f   : > { %v516_v51 = vsel %vm503_vm7, %v515_v50, 0.0 }
 0x340   : > { %517 = vadd.xlane.f32.xlu1 %v516_v51 }
 0x341   : > { %v506_v52 = vpop.xlane.xlu0 %505 }
 0x342   : > { %v507_v53 = vrot.slane %v506_v52, 4 }
 0x344   : > { %v508_v54 = vadd.f32 %v507_v53, %v506_v52 }
 0x346   : > { %v509_v55 = vrot.slane %v508_v54, 2 }
 0x348   : > { %v510_v56 = vadd.f32 %v509_v55, %v508_v54 }
 0x34a   : > { %v511_v57 = vrot.slane %v510_v56, 1 }
 0x34c   : > { %v512_v58 = vadd.f32 %v511_v57, %v510_v56 }
 0x34e   : > { %691 = vpush %v512_v58 }
 0x37f   : > { %s692_s11 = spop %691 }
 0x380   : > { %s514_s12 = smul.f32 0.083333336, %s692_s11  ;;  %s765_s11 = scalar_lea.vmem %s764_s10, 256 }
 0x381   : > { %p767_p2 = scmp.lt.s32.totalorder %s765_s11, %s759_s9 }
 0x383   : > { %p768_p3 = por %p767_p2, %p766_p1 }
 0x385   : > { %p769_p5 = pnand %p768_p3, %p762_p0 }
 0x3cd   : > { %v518_v59 = vpop.xlane.xlu1 %517 }
 0x3ce   : > { %v519_v60 = vrot.slane %v518_v59, 4 }
 0x3d0   : > { %v520_v61 = vadd.f32 %v519_v60, %v518_v59 }
 0x3d2   : > { %v521_v62 = vrot.slane %v520_v61, 2 }
 0x3d4   : > { %v522_v63 = vadd.f32 %v521_v62, %v520_v61 }
 0x3d6   : > { %v523_v0 = vrot.slane %v522_v63, 1 }
 0x3d8   : > { %v524_v1 = vadd.f32 %v523_v0, %v522_v63 }
 0x3da   : > { %693 = vpush %v524_v1 }
 0x40b   : > { %s694_s13 = spop %693 }
 0x40c   : > { %s526_s14 = smul.f32 0.00032552084, %s694_s13 }
 0x40e   : > { %s527_s16 = sadd.f32 %s526_s14, %s514_s12 }
 0x410   : > { %v534_v2 = vstv %s527_s16 }
 0x411   : > { %536 = vst [vmem:[%s326_s17] sm:$0xff] %v534_v2 }
 0x412   : > { %772 = shalt.err (!%p769_p5)
}
 0x413   : > { %s773_s8 = scalar_lea.hbm %s962_s29, 128  ;;  %s777_s14 = scalar_lea.hbm %s1014_s5, 256 }
 0x414   : > { %p774_p6 = scmp.ne.s32.totalorder %s962_s29, %s773_s8  ;;  %p778_p10 = scmp.lt.u32.totalorder %s962_s29, %s1014_s5 }
 0x415   : > { %p779_p11 = scmp.lt.u32.totalorder %s777_s14, %s773_s8  ;;  %p781_p13 = scmp.lt.u32.totalorder %s773_s8, %s962_s29 }
 0x416   : > { %p775_p7 = pnand %p774_p6, %p913_p4 }
 0x417   : > { %p780_p12 = por %p779_p11, %p778_p10 }
 0x418   : > { %p776_p9 = pneg %p775_p7 }
 0x419   : > { %p782_p0 = por %p781_p13, %p780_p12 }
 0x41b   : > { %p783_p1 = pnand %p782_p0, %p776_p9 }
 0x41d   : > { %786 = shalt.err (!%p783_p1)
}
 0x41e   : > { %695 = dma.vmem_to_hbm [thread:$0]  (%p913_p4), %s964_s24, 128, %s962_s29, %s538_s7  }
 0x41f PF: > { %p701_p2 = scmp.ge.s32.totalorder %s837_s23, 2  ;;  %s563_s17 = sand.u32 1, %s817_s18  }
 0x420   : > { %s564_s25 = scalar_lea.sflag [#allocation3], %s563_s17 }
 0x421   : > { %p698_p3 = pnand %p701_p2, %p920_p8 }
 0x423   : > { %812 = dma.done.wait (!%p698_p3), %s564_s25, 128  }
 0x424   : > { %814 = vsyncadd (!%p698_p3), %s564_s25, 4294967168  ;;  %s18_s23 = sadd.s32 1, %s837_s23   ;;  %s1017_s18 = smov %s821_s19 }
 0x425   : > { %p15_p5 = scmp.ge.s32.totalorder %s18_s23, 4   ;;  %s1018_s19 = smov %s825_s20 }
 0x426   : > { %s1019_s20 = smov %s926_s6  ;;  %s1020_s21 = smov %s833_s22 }
 0x427   : > { %s1021_s22 = smov %s1023_s26  ;;  %17 = sbr.rel (!%p15_p5) target bundleno = 4 (0x4), region = 88 }
 0x42e   :  { %569 = vsyncpa [#allocation3], 1 }
 0x42f   :  { %571 = vsyncpa [#allocation3 + $0x1], 1 }

</bundles_post_ra>
